<compile_context>
chip_gen: v5e
topology: v5e:2x2
jax: 0.10.0
libtpu: 0.0.40
codegen_flags: <defaults>
</compile_context>

<pallas_src>
import functools

import jax
import jax.numpy as jnp
from jax.experimental import pallas as pl
from jax.experimental.pallas import tpu as pltpu


def _head_kernel(x_ref, w_ref, b_ref, o_ref, acc_ref, *, hw_total):
    """One (sample-tile, spatial-tile) grid step.

    x_ref:   (S_TILE, Cin, T_HW)  spatial tile of NCHW input (HW flattened, on lanes)
    w_ref:   (Cin, Cout)          1x1-conv weight
    b_ref:   (1, Cout)            bias
    o_ref:   (S_TILE, 1)          float32 argmax indices (written on last step only)
    acc_ref: (S_TILE, Cin, T_HW)  f32 running elementwise partial sums (scratch)
    """
    k = pl.program_id(1)

    @pl.when(k == 0)
    def _init():
        acc_ref[...] = jnp.zeros_like(acc_ref)

    # TODO(synk): nn.Dropout is stochastic in train mode; implemented as identity
    # (inference semantics). Train-mode parity would need pltpu.prng_seed/bits.
    # Elementwise f32 accumulation (VPU has slack under the mem-bound DMA);
    # the cross-lane reduce is deferred to the finalize branch.
    acc_ref[...] += x_ref[...].astype(jnp.float32)

    @pl.when(k == pl.num_programs(1) - 1)
    def _finalize():
        # AdaptiveAvgPool2d(1): one XLU reduce over the spatial (lane) axis.
        pooled = jnp.sum(acc_ref[...], axis=-1) * (1.0 / hw_total)     # (S, Cin)

        # 1x1 conv == dense layer over channels (commutes with the avg pool).
        logits = jnp.dot(pooled, w_ref[...],
                         preferred_element_type=jnp.float32) + b_ref[...]  # (S, Cout)

        # Sigmoid kept for exact torch parity (argmax is monotone-invariant,
        # so this only matters for fp-saturation tie-breaking); EUP exp +
        # approx reciprocal, once per sample tile.
        probs = pl.reciprocal(1.0 + jnp.exp(-logits), approx=True)

        # argmax over channels (first index of the max, matching torch).
        s, c = probs.shape
        max_p = jnp.max(probs, axis=1, keepdims=True)                   # (S, 1)
        col = jax.lax.broadcasted_iota(jnp.int32, (s, c), 1)
        idx = jnp.min(jnp.where(probs == max_p, col, c), axis=1,
                      keepdims=True)                                    # (S, 1)

        o_ref[...] = idx.astype(jnp.float32)


def head_for_classification(x_nchw, weight, bias, *, s_tile=None, t_hw=None):
    """x_nchw: (N, Cin, H, W); weight: (Cout, Cin, 1, 1); bias: (Cout,)."""
    n, cin, h, w = x_nchw.shape
    cout = weight.shape[0]
    hw = h * w

    # Free reshape of contiguous NCHW -- no transpose pass, spatial on lanes.
    x = x_nchw.reshape(n, cin, hw)
    w_mat = weight.reshape(cout, cin).T.astype(jnp.float32)   # (Cin, Cout)
    b_row = bias.reshape(1, cout).astype(jnp.float32)         # (1, Cout)

    # Tile choices: blocks keep the last two dims either (8,128)-divisible or
    # equal to the full extent.
    if t_hw is None:
        t_hw = next((t for t in (512, 256, 128) if hw % t == 0), hw)
    if s_tile is None:
        s_tile = 8 if n % 8 == 0 else n
    assert hw % t_hw == 0, (hw, t_hw)
    assert n % s_tile == 0, (n, s_tile)

    grid = (n // s_tile, hw // t_hw)

    # NOTE(v7x sizing): keep 2 * s_tile*cin*t_hw*itemsize (double buffer) plus
    # the f32 accumulator well under the 32 MiB scoped-VMEM default (64 MiB
    # physical on v7x); raise vmem_limit_bytes only if a larger t_hw needs it.
    cost = pl.CostEstimate(
        flops=2 * n * cin * hw + 2 * n * cin * cout,
        transcendentals=n * cout,
        bytes_accessed=(x.size * x.dtype.itemsize
                        + w_mat.size * 4 + b_row.size * 4 + n * 4),
    )

    out = pl.pallas_call(
        functools.partial(_head_kernel, hw_total=hw),
        out_shape=jax.ShapeDtypeStruct((n, 1), jnp.float32),
        grid_spec=pltpu.PrefetchScalarGridSpec(
            num_scalar_prefetch=0,
            grid=grid,
            in_specs=[
                pl.BlockSpec((s_tile, cin, t_hw), lambda i, k: (i, 0, k)),
                pl.BlockSpec((cin, cout), lambda i, k: (0, 0)),
                pl.BlockSpec((1, cout), lambda i, k: (0, 0)),
            ],
            out_specs=pl.BlockSpec((s_tile, 1), lambda i, k: (i, 0)),
            scratch_shapes=[pltpu.VMEM((s_tile, cin, t_hw), jnp.float32)],
        ),
        compiler_params=pltpu.CompilerParams(
            dimension_semantics=("parallel", "arbitrary")),
        cost_estimate=cost,
    )(x, w_mat, b_row)
    return out


if __name__ == "__main__":
    key = jax.random.PRNGKey(0)
    k_x, k_w, k_b = jax.random.split(key, 3)

    N, CH_IN, CH_OUT, H, W = 2, 4, 8, 16, 16

    x = jax.random.normal(k_x, (N, CH_IN, H, W), dtype=jnp.float32)
    # Conv2d(ch_in, ch_out, 1, 1) parameters, deterministic init.
    weight = jax.random.normal(k_w, (CH_OUT, CH_IN, 1, 1), dtype=jnp.float32) * 0.5
    bias = jax.random.normal(k_b, (CH_OUT,), dtype=jnp.float32) * 0.1

    # t_hw=128 exercises the multi-step spatial accumulation (grid = (1, 2)).
    out = head_for_classification(x, weight, bias, s_tile=N, t_hw=128)
    out = jax.block_until_ready(out)

    # Sanity check against a pure-JAX reference of the same forward pass.
    pooled_ref = jnp.mean(x, axis=(2, 3))                          # (N, Cin)
    logits_ref = pooled_ref @ weight.reshape(CH_OUT, CH_IN).T + bias
    probs_ref = jax.nn.sigmoid(logits_ref)
    ref = jnp.argmax(probs_ref, axis=1)[:, None].astype(jnp.float32)
    assert out.shape == (N, 1), out.shape
    assert jnp.allclose(out, ref), (out, ref)

    print("KERNEL_OK")
</pallas_src>

<mosaic_0001>
module attributes {stable_mosaic.version = 11 : i64} {
  func.func @_head_kernel(%arg0: i32, %arg1: i32, %arg2: memref<2x4x128xf32, #tpu.memory_space<vmem>>, %arg3: memref<4x8xf32, #tpu.memory_space<vmem>>, %arg4: memref<1x8xf32, #tpu.memory_space<vmem>>, %arg5: memref<2x1xf32, #tpu.memory_space<vmem>>, %arg6: memref<2x4x128xf32, #tpu.memory_space<vmem>>) attributes {dimension_semantics = [#tpu.dimension_semantics<parallel>, #tpu.dimension_semantics<arbitrary>], iteration_bounds = array<i64: 1, 2>, scalar_prefetch = 0 : i64, scratch_operands = 1 : i64, tpu.core_type = #tpu.core_type<tc>, window_params = [{transform_indices = @transform_0, window_bounds = array<i64: 2, 4, 128>}, {pipeline_mode = #tpu.pipeline_mode<synchronous>, transform_indices = @transform_1, window_bounds = array<i64: 4, 8>}, {pipeline_mode = #tpu.pipeline_mode<synchronous>, transform_indices = @transform_2, window_bounds = array<i64: 1, 8>}, {transform_indices = @transform_3, window_bounds = array<i64: 2, 1>}]} {
    %c0_i32 = arith.constant 0 : i32
    %0 = arith.cmpi eq, %arg1, %c0_i32 : i32
    %1 = arith.extui %0 : i1 to i32
    %c0_i32_0 = arith.constant 0 : i32
    %2 = arith.cmpi ne, %1, %c0_i32_0 : i32
    scf.if %2 {
      %cst = arith.constant 0.000000e+00 : f32
      %10 = vector.broadcast %cst : f32 to vector<2x4x128xf32>
      %c0_10 = arith.constant 0 : index
      %c0_11 = arith.constant 0 : index
      %c0_12 = arith.constant 0 : index
      %11 = vector.load %arg6[%c0_10, %c0_11, %c0_12] : memref<2x4x128xf32, #tpu.memory_space<vmem>>, vector<2x4x128xf32>
      tpu.vector_store %arg6[%c0_10, %c0_11, %c0_12], %10 {strides = array<i32>} : memref<2x4x128xf32, #tpu.memory_space<vmem>>, vector<2x4x128xf32>,
    } else {
    }
    %c0 = arith.constant 0 : index
    %c0_1 = arith.constant 0 : index
    %c0_2 = arith.constant 0 : index
    %3 = vector.load %arg6[%c0, %c0_1, %c0_2] : memref<2x4x128xf32, #tpu.memory_space<vmem>>, vector<2x4x128xf32>
    %c0_3 = arith.constant 0 : index
    %c0_4 = arith.constant 0 : index
    %c0_5 = arith.constant 0 : index
    %4 = vector.load %arg2[%c0_3, %c0_4, %c0_5] : memref<2x4x128xf32, #tpu.memory_space<vmem>>, vector<2x4x128xf32>
    %5 = arith.addf %3, %4 : vector<2x4x128xf32>
    %c0_6 = arith.constant 0 : index
    %c0_7 = arith.constant 0 : index
    %c0_8 = arith.constant 0 : index
    %6 = vector.load %arg6[%c0_6, %c0_7, %c0_8] : memref<2x4x128xf32, #tpu.memory_space<vmem>>, vector<2x4x128xf32>
    tpu.vector_store %arg6[%c0_6, %c0_7, %c0_8], %5 {strides = array<i32>} : memref<2x4x128xf32, #tpu.memory_space<vmem>>, vector<2x4x128xf32>,
    %c1_i32 = arith.constant 1 : i32
    %7 = arith.cmpi eq, %arg1, %c1_i32 : i32
    %8 = arith.extui %7 : i1 to i32
    %c0_i32_9 = arith.constant 0 : i32
    %9 = arith.cmpi ne, %8, %c0_i32_9 : i32
    scf.if %9 {
      %c0_10 = arith.constant 0 : index
      %c0_11 = arith.constant 0 : index
      %c0_12 = arith.constant 0 : index
      %10 = vector.load %arg6[%c0_10, %c0_11, %c0_12] : memref<2x4x128xf32, #tpu.memory_space<vmem>>, vector<2x4x128xf32>
      %cst = arith.constant dense<0.000000e+00> : vector<2x4xf32>
      %11 = vector.multi_reduction <add>, %10, %cst [2] : vector<2x4x128xf32> to vector<2x4xf32>
      %cst_13 = arith.constant 3.906250e-03 : f32
      %12 = vector.broadcast %cst_13 : f32 to vector<2x4xf32>
      %13 = arith.mulf %11, %12 : vector<2x4xf32>
      %c0_14 = arith.constant 0 : index
      %c0_15 = arith.constant 0 : index
      %14 = vector.load %arg3[%c0_14, %c0_15] : memref<4x8xf32, #tpu.memory_space<vmem>>, vector<4x8xf32>
      %cst_16 = arith.constant dense<0.000000e+00> : vector<2x8xf32>
      %15 = tpu.matmul %13, %14, %cst_16 {dimension_numbers = #tpu.dot_dimension_numbers<[1], [0], [0], [1], [0, 0, 1, 1], [], []>} : vector<2x4xf32>, vector<4x8xf32>, vector<2x8xf32> -> vector<2x8xf32>
      %c0_17 = arith.constant 0 : index
      %c0_18 = arith.constant 0 : index
      %16 = vector.load %arg4[%c0_17, %c0_18] : memref<1x8xf32, #tpu.memory_space<vmem>>, vector<1x8xf32>
      %17 = vector.broadcast %16 : vector<1x8xf32> to vector<2x8xf32>
      %18 = arith.addf %15, %17 : vector<2x8xf32>
      %cst_19 = arith.constant 0.000000e+00 : f32
      %19 = vector.broadcast %cst_19 : f32 to vector<2x8xf32>
      %20 = arith.subf %19, %18 : vector<2x8xf32>
      %21 = math.exp %20 : vector<2x8xf32>
      %cst_20 = arith.constant 1.000000e+00 : f32
      %22 = vector.broadcast %cst_20 : f32 to vector<2x8xf32>
      %23 = arith.addf %22, %21 : vector<2x8xf32>
      %24 = tpu.reciprocal %23 {approx = true} : vector<2x8xf32> -> vector<2x8xf32>
      %cst_21 = arith.constant dense<0xFF800000> : vector<2xf32>
      %25 = vector.multi_reduction <maximumf>, %24, %cst_21 [1] : vector<2x8xf32> to vector<2xf32>
      %26 = vector.shape_cast %25 : vector<2xf32> to vector<2x1xf32>
      %27 = tpu.iota {dimensions = array<i32: 1>} : vector<2x8xi32>
      %28 = vector.broadcast %26 : vector<2x1xf32> to vector<2x8xf32>
      %29 = arith.cmpf oeq, %24, %28 : vector<2x8xf32>
      %c8_i32 = arith.constant 8 : i32
      %30 = vector.broadcast %c8_i32 : i32 to vector<2x8xi32>
      %31 = arith.select %29, %27, %30 : vector<2x8xi1>, vector<2x8xi32>
      %cst_22 = arith.constant dense<2147483647> : vector<2xi32>
      %32 = vector.multi_reduction <minsi>, %31, %cst_22 [1] : vector<2x8xi32> to vector<2xi32>
      %33 = vector.shape_cast %32 : vector<2xi32> to vector<2x1xi32>
      %34 = arith.sitofp %33 : vector<2x1xi32> to vector<2x1xf32>
      %c0_23 = arith.constant 0 : index
      %c0_24 = arith.constant 0 : index
      %35 = vector.load %arg5[%c0_23, %c0_24] : memref<2x1xf32, #tpu.memory_space<vmem>>, vector<2x1xf32>
      tpu.vector_store %arg5[%c0_23, %c0_24], %34 {strides = array<i32>} : memref<2x1xf32, #tpu.memory_space<vmem>>, vector<2x1xf32>,
    } else {
    }
    return
  }
  func.func @transform_0(%arg0: i32, %arg1: i32) -> (i32, i32, i32) {
    %c0_i32 = arith.constant 0 : i32
    %c0_i32_0 = arith.constant 0 : i32
    return %arg0, %c0_i32, %arg1 : i32, i32, i32
  }
  func.func @transform_1(%arg0: i32, %arg1: i32) -> (i32, i32) {
    %c0_i32 = arith.constant 0 : i32
    %c0_i32_0 = arith.constant 0 : i32
    %c0_i32_1 = arith.constant 0 : i32
    return %c0_i32, %c0_i32_0 : i32, i32
  }
  func.func @transform_2(%arg0: i32, %arg1: i32) -> (i32, i32) {
    %c0_i32 = arith.constant 0 : i32
    %c0_i32_0 = arith.constant 0 : i32
    %c0_i32_1 = arith.constant 0 : i32
    return %c0_i32, %c0_i32_0 : i32, i32
  }
  func.func @transform_3(%arg0: i32, %arg1: i32) -> (i32, i32) {
    %c0_i32 = arith.constant 0 : i32
    %c0_i32_0 = arith.constant 0 : i32
    return %arg0, %c0_i32 : i32, i32
  }
}

</mosaic_0001>

<bundles_post_ra>
// kernel: tpu_custom_call.1
= control target key start
LH: loop header
LB: loop body
LE: loop exit
PB: predicated region body
PF: predicated region fallthrough
CT: control target
= control target key end

     0   :  { %8 = vsyncpa [#allocation4], 0  ;;  %s756_s0 = inlined_call_operand.hbm [shape: f32[2,4,256], index: 0, kind: input, shape index: {}]   ;;  %s757_s1 = inlined_call_operand.hbm [shape: f32[4,8], index: 1, kind: input, shape index: {}]   ;;  %s758_s2 = inlined_call_operand.vmem [shape: f32[1,8], index: 2, kind: input, shape index: {}]   ;;  %s759_s3 = inlined_call_operand.vmem [shape: f32[2,1], index: 3, kind: output, shape index: {}]  }
   0x1   :  { %10 = vsyncpa [#allocation4 + $0x1], 0 }
   0x2   :  { %11 = vsyncpa [#allocation6], 0  ;;  %s634_s12 = smov 0   ;;  %s636_s13 = smov 0  }
   0x3   :  { %s638_s14 = smov 0   ;;  %s640_s15 = smov 0  }
   0x4   :  { %s642_s16 = smov 0   ;;  %s644_s17 = smov 0  }
   0x5 LB: > { %s402_s18 = sadd.s32 4294967295, %s607_s17   ;;  %s38_s19 = sadd.s32 1, %s595_s14  ;;  %s607_s17 = sphi %s644_s17, %s17_s17   ;;  %s603_s16 = sphi %s642_s16, %s769_s16   ;;  %s599_s15 = sphi %s640_s15, %s768_s15   ;;  %s595_s14 = sphi %s638_s14, %s767_s14   ;;  %s591_s13 = sphi %s636_s13, %s766_s13   ;;  %s587_s12 = sphi %s634_s12, %s765_s12  }
   0x6   : > { %p45_p0 = scmp.ne.s32.totalorder %s595_s14, %s591_s13  ;;  %p46_p1 = scmp.eq.s32.totalorder %s607_s17, 0 }
   0x7   : > { %p51_p2 = scmp.ne.s32.totalorder %s591_s13, %s587_s12  ;;  %p668_p3 = scmp.eq.s32.totalorder %s402_s18, 0 }
   0x8   : > { %p672_p4 = por %p46_p1, %p45_p0  ;;  %p403_p5 = scmp.ge.s32.totalorder %s607_s17, 1 }
   0x9   : > { %p679_p6 = por %p668_p3, %p51_p2  ;;  %p130_p7 = scmp.lt.s32.totalorder %s607_s17, 3 }
   0xa   : > { %s142_s25 = sshll.u32 %s757_s1, 4  ;;  %s609_s27 = smov [#allocation5]   ;;  %s143_s25 = int_to_ptr.hbm [resolvable:$true] %s142_s25 }
   0xb   : > { %p687_p8 = pnand %p403_p5, %p130_p7  ;;  %s144_s28 = sshll.u32 %s609_s27, 4  ;;  %s145_s28 = int_to_ptr.vmem [resolvable:$true] %s144_s28 }
   0xc   : > { %p433_p10 = scmp.lt.s32.totalorder %s607_s17, 2  ;;  %s26_s30 = sadd.s32 1, %s603_s16 }
   0xd   : > { %p424_p9 = pneg %p687_p8  ;;  %p27_p13 = scmp.ge.s32.totalorder %s26_s30, 2 }
   0xe   : > { %p698_p12 = pnand %p433_p10, %p672_p4  ;;  %s158_s4 = sand.u32 1, %s595_s14  }
   0xf   : > { %p425_p11 = pnand %p424_p9, %p668_p3  ;;  %s407_s5 = sshll.u32 %s603_s16, 2 }
  0x10   : > { %s771_s30 = smov (%p27_p13, %s26_s30), 0  ;;  %s406_s6 = sshll.u32 %s158_s4, 3 }
  0x11   : > { %427 = dma.hbm_to_vmem [thread:$0]  (!%p425_p11), %s143_s25, 64, %s145_s28, [#allocation6]  }
  0x12   : > { %s34_s7 = ssub.s32 %s603_s16, %s771_s30  ;;  %s169_s10 = scalar_lea.hbm %s756_s0, %s407_s5 }
  0x13   : > { %p36_p0 = scmp.eq.s32.totalorder %s34_s7, 0  ;;  %s170_s11 = sshll.u32 %s169_s10, 4  ;;  %s171_s11 = int_to_ptr.hbm [resolvable:$true] %s170_s11 }
  0x14   : > { %s162_s12 = scalar_lea.vmem [#allocation3], %s406_s6  ;;  %s159_s23 = scalar_lea.sflag [#allocation4], %s158_s4 }
  0x15   : > { %s172_s18 = sshll.u32 %s162_s12, 4  ;;  %s610_s24 = smov 128   ;;  %s173_s18 = int_to_ptr.vmem [resolvable:$true] %s172_s18 }
  0x16   : > { %s715_s21 = scalar_select %p36_p0, %s595_s14, %s38_s19  }
  0x17   : > { %s611_s25 = smov 64   ;;  %s612_s27 = smov 4  }
  0x18   : > { %431 = dma.hbm_to_vmem [thread:$0]  (!%p698_p12), %s171_s11, 128, %s173_s18, %s159_s23, %s610_s24, %s611_s25, %s612_s27  }
  0x19   : > { %184 = sbr.rel (%p687_p8) target bundleno = 702 (0x2be), region = 32  ;;  %s186_s28 = sand.u32 (!%p687_p8), 1, %s591_s13  }
  0x1a   : > { %s409_s5 = sshll.u32 (!%p687_p8), %s186_s28, 3  ;;  %s187_s6 = scalar_lea.sflag (!%p687_p8), [#allocation4], %s186_s28 }
  0x1b   : > { %s190_s7 = scalar_lea.vmem (!%p687_p8), [#allocation3], %s409_s5 }
  0x1e   : > { %578 = dma.done.wait (%p679_p6), %s187_s6, 128  }
  0x1f   : > { %580 = vsyncadd (%p679_p6), %s187_s6, 4294967168 }
  0x20   : > { %582 = dma.done.wait (%p668_p3), [#allocation6], 64  }
  0x21   : > { %584 = vsyncadd (%p668_p3), [#allocation6], 4294967232  ;;  %p411_p1 = scmp.ne.s32.totalorder %s599_s15, 0 }
  0x23   : > { %226 = sbr.rel (%p411_p1) target bundleno = 43 (0x2b), region = 44 }
  0x28   : > { %v613_v0 = vmov 0.0  }
  0x29   : > { %227 = vst [vmem:[#allocation2] sm:$0xf] %v613_v0 }
  0x2a   : > { %228 = vst [vmem:[#allocation2 + $0x4] sm:$0xf] %v613_v0 }
  0x2b PF: > { %v231_v2 = vld [vmem:[%s190_s7] sm:$0xf]  ;;  %v232_v5 = vld [vmem:[%s190_s7 + $0x4] sm:$0xf]  ;;  %p412_p2 = scmp.ne.s32.totalorder %s599_s15, 1 }
  0x30   : > { %v229_v1 = vld [vmem:[#allocation2] sm:$0xf]  ;;  %240 = sbr.rel (%p412_p2) target bundleno = 702 (0x2be), region = 48 }
  0x31   : > { %v230_v3 = vld [vmem:[#allocation2 + $0x4] sm:$0xf]  ;;  %v233_v4 = vadd.f32 %v231_v2, %v229_v1 }
  0x32   : > { %v234_v6 = vadd.f32 %v232_v5, %v230_v3 }
  0x33   : > { %235 = vst [vmem:[#allocation2] sm:$0xf] %v233_v4 }
  0x34   : > { %236 = vst [vmem:[#allocation2 + $0x4] sm:$0xf] %v234_v6 }
  0x35   : > { %vm243_vm0 = vcmask 1043456   ;;  %v252_v11 = vld [vmem:[#allocation5] sm:$0xf]  ;;  %v259_v13 = vlaneseq  ;;  %vm263_vm1 = vcmask 1041409   ;;  %vm265_vm2 = vcmask 31744  }
  0x36   : > { %413 = vmatpush.msk.msra.mxu0 %vm243_vm0, %v252_v11  ;;  %v488_v21 = vld [vmem:[%s758_s2] ss:$0 sm:$0xff]  ;;  %vm296_vm3 = vcmask 58368   ;;  %vm318_vm6 = vcmask 1024  }
  0x37   : > { %v260_v14 = vand.u32 127, %v259_v13 }
  0x3a   : > { %v241_v7 = vld [vmem:[#allocation2] sm:$0xf] }
  0x3b   : > { %v244_v8 = vsel %vm243_vm0, %v241_v7, 0.0  ;;  %v242_v9 = vld [vmem:[#allocation2 + $0x4] sm:$0xf] }
  0x3c   : > { %245 = vadd.xlane.f32.xlu0 %v244_v8  ;;  %v247_v10 = vsel %vm243_vm0, %v242_v9, 0.0 }
  0x44   : > { %248 = vadd.xlane.f32.xlu0 %v247_v10 }
  0xaf   : > { %v246_v12 = vpop.xlane.xlu0 %245 }
  0xb0   : > { %v250_v15 = vmul.f32 0.00390625, %v246_v12 }
  0xb2   : > { %v261_v18 = vperm.slane %v250_v15, %v260_v14 }
  0xb7   : > { %v249_v16 = vpop.xlane.xlu0 %248 }
  0xb8   : > { %v251_v17 = vmul.f32 0.00390625, %v249_v16 }
  0xba   : > { %v262_v19 = vperm.slane %v251_v17, %v260_v14 }
  0xbc   : > { %v264_v20 = vsel %vm263_vm1, %v262_v19, %v261_v18 }
  0xbd   : > { %414 = vmatmul.msk.f32.vlgmr.msra.gmra.mxu0 %vm265_vm2, %v264_v20 }
 0x13a   : > { %v288_v22 = vpop.f32.mrf.mxu0 }
 0x13b   : > { %v289_v23 = vadd.f32 %v488_v21, %v288_v22 }
 0x13d   : > { %v291_v24 = vsub.f32 0.0, %v289_v23 }
 0x13f   : > { %v292_v25 = vmul.f32 1.442695, %v291_v24 }
 0x141   : > { %489 = vpow2.f32 %v292_v25 }
 0x147   : > { %v490_v26 = vpop.eup %489 }
 0x148   : > { %v294_v27 = vadd.f32 1.0, %v490_v26 }
 0x14a   : > { %491 = vrcp.f32 %v294_v27 }
 0x150   : > { %v492_v28 = vpop.eup %491 }
 0x151   : > { %v297_v29 = vsel %vm296_vm3, %v492_v28, -inf }
 0x152   : > { %298 = vmax.xlane.f32.xlu1 %v297_v29 }
 0x1c5   : > { %v299_v30 = vpop.xlane.xlu1 %298 }
 0x1c6   : > { %vm300_vm4 = vcmp.eq.f32.partialorder %v492_v28, %v299_v30 }
 0x1c7   : > { %v301_v31 = vsel %vm300_vm4, %v260_v14, 8 }
 0x1c8   : > { %v302_v32 = vsel %vm296_vm3, %v301_v31, 2147483647 }
 0x1c9   : > { %v304_v33 = vshra.s32 %v302_v32, 16  ;;  %v303_v35 = vand.u32 65535, %v302_v32 }
 0x1cb   : > { %v306_v34 = vcvt.s32.f32 %v304_v33  ;;  %v305_v37 = vcvt.s32.f32 %v303_v35 }
 0x1cd   : > { %307 = vmin.xlane.f32.xlu1 %v306_v34 }
 0x240   : > { %v308_v36 = vpop.xlane.xlu1 %307 }
 0x241   : > { %vm309_vm5 = vcmp.eq.f32.partialorder %v306_v34, %v308_v36  ;;  %v314_v39 = vcvt.f32.s32 %v308_v36 }
 0x242   : > { %v310_v38 = vsel %vm309_vm5, %v305_v37, inf }
 0x243   : > { %311 = vmin.xlane.f32.xlu2 %v310_v38  ;;  %v315_v41 = vshll.u32 %v314_v39, 16 }
 0x2b6   : > { %v312_v40 = vpop.xlane.xlu2 %311 }
 0x2b7   : > { %v313_v42 = vcvt.f32.s32 %v312_v40 }
 0x2b9   : > { %v316_v43 = vadd.s32 %v315_v41, %v313_v42 }
 0x2bb   : > { %v317_v44 = vcvt.s32.f32 %v316_v43 }
 0x2bd   : > { %319 = vst.msk [vmem:[%s759_s3] sm:$0x3] %vm318_vm6, %v317_v44 }
 0x2be PF: > { %s17_s17 = sadd.s32 1, %s607_s17   ;;  %s765_s12 = smov %s591_s13 }
 0x2bf   : > { %p14_p3 = scmp.ge.s32.totalorder %s17_s17, 4   ;;  %s766_s13 = smov %s595_s14 }
 0x2c0   : > { %s767_s14 = smov %s715_s21  ;;  %s768_s15 = smov %s603_s16 }
 0x2c1   : > { %s769_s16 = smov %s771_s30  ;;  %16 = sbr.rel (!%p14_p3) target bundleno = 5 (0x5), region = 84 }
 0x2c6   :  { %339 = vsyncpa [#allocation4], 1 }
 0x2c7   :  { %341 = vsyncpa [#allocation4 + $0x1], 1 }
 0x2c8   :  { %342 = vsyncpa [#allocation6], 1 }

</bundles_post_ra>
